<compile_context>
chip_gen: v7x
topology: tpu7x:2x2x1
jax: 0.10.0
libtpu: 0.0.40
codegen_flags: <defaults>
</compile_context>

<pallas_src>
import functools

import jax
import jax.numpy as jnp
from jax.experimental import pallas as pl
from jax.experimental.pallas import tpu as pltpu

LN_EPS = 1e-5  # PyTorch nn.LayerNorm default


def _round_up(x, m):
    return ((x + m - 1) // m) * m


def _sublane_multiple(dtype):
    # f32 -> 8 rows per sublane group, bf16 -> 16, int8/fp8 -> 32.
    return {4: 8, 2: 16, 1: 32}[jnp.dtype(dtype).itemsize]


def _pick_block_rows(rows, dtype, block_rows):
    sub = _sublane_multiple(dtype)
    bm = min(block_rows, _round_up(rows, sub))
    return _round_up(bm, sub)


def _vmem_limit_bytes(*tile_bytes):
    # 2x headroom for double-buffering; keep within v7x's 64 MiB physical VMEM.
    need = 2 * sum(tile_bytes)
    return int(min(64 * 1024 * 1024, max(32 * 1024 * 1024, need)))


# --------------------- fused LayerNorm + Linear kernel -----------------------
def _prenorm_linear_kernel(x_ref, g_ref, b_ref, w_ref, bias_ref, o_ref):
    x = x_ref[...].astype(jnp.float32)                     # (bm, D)
    d = x.shape[-1]
    # Single pass over lanes: sum(x) and sum(x*x) -> mean / var.
    s1 = jnp.sum(x, axis=-1, keepdims=True)
    s2 = jnp.sum(x * x, axis=-1, keepdims=True)
    mean = s1 * (1.0 / d)
    var = jnp.maximum(s2 * (1.0 / d) - mean * mean, 0.0)
    inv = jax.lax.rsqrt(var + LN_EPS)
    y = (x - mean) * inv
    y = y * g_ref[...].astype(jnp.float32) + b_ref[...].astype(jnp.float32)
    # Matmul in the input/weight dtype (bf16 -> bf16 MXU operands), f32 accum.
    acc = jnp.dot(y.astype(w_ref.dtype), w_ref[...],
                  preferred_element_type=jnp.float32)
    acc = acc + bias_ref[...].astype(jnp.float32)
    o_ref[...] = acc.astype(o_ref.dtype)


def prenorm_linear(x, gamma, beta, w, bias, *, block_rows=256):
    """Fused PreNorm with a Linear fn: LayerNorm(x) @ w.T + bias.  x: (B, N, D)."""
    b, n, d = x.shape
    dout, din = w.shape
    assert din == d
    rows = b * n
    x2d = x.reshape(rows, d)

    bm = _pick_block_rows(rows, x.dtype, block_rows)
    rows_p = _round_up(rows, bm)
    if rows_p != rows:
        x2d = jnp.pad(x2d, ((0, rows_p - rows), (0, 0)))

    w_t = jnp.asarray(w, dtype=x.dtype).T                  # (d, dout)
    g2d = gamma.reshape(1, d)
    b2d = beta.reshape(1, d)
    bias2d = bias.reshape(1, dout)

    itemsize = jnp.dtype(x.dtype).itemsize
    vmem = _vmem_limit_bytes(bm * d * itemsize,             # x tile
                             bm * dout * itemsize,          # out tile
                             d * dout * itemsize,           # resident weight
                             (2 * d + dout) * 4)            # gamma/beta/bias
    # TODO(synk): for very large D (weight bytes approaching v7x's 64 MiB VMEM),
    # add a K-reduction grid axis + f32 accumulator scratch instead of keeping
    # the whole weight resident.

    grid = (rows_p // bm,)
    out2d = pl.pallas_call(
        _prenorm_linear_kernel,
        out_shape=jax.ShapeDtypeStruct((rows_p, dout), x.dtype),
        grid_spec=pltpu.PrefetchScalarGridSpec(
            num_scalar_prefetch=0,
            grid=grid,
            in_specs=[
                pl.BlockSpec((bm, d), lambda i: (i, 0)),
                pl.BlockSpec((1, d), lambda i: (0, 0)),
                pl.BlockSpec((1, d), lambda i: (0, 0)),
                pl.BlockSpec((d, dout), lambda i: (0, 0)),   # weight resident
                pl.BlockSpec((1, dout), lambda i: (0, 0)),
            ],
            out_specs=pl.BlockSpec((bm, dout), lambda i: (i, 0)),
        ),
        compiler_params=pltpu.CompilerParams(
            dimension_semantics=("parallel",),
            vmem_limit_bytes=vmem,
        ),
    )(x2d, g2d, b2d, w_t, bias2d)
    return out2d[:rows].reshape(b, n, dout)


# ----------------------- generic path: standalone LN -------------------------
def _layernorm_kernel(x_ref, g_ref, b_ref, o_ref):
    x = x_ref[...].astype(jnp.float32)                     # (bm, D)
    d = x.shape[-1]
    s1 = jnp.sum(x, axis=-1, keepdims=True)
    s2 = jnp.sum(x * x, axis=-1, keepdims=True)
    mean = s1 * (1.0 / d)
    var = jnp.maximum(s2 * (1.0 / d) - mean * mean, 0.0)
    y = (x - mean) * jax.lax.rsqrt(var + LN_EPS)
    y = y * g_ref[...].astype(jnp.float32) + b_ref[...].astype(jnp.float32)
    o_ref[...] = y.astype(o_ref.dtype)


def layernorm_pallas(x2d, gamma, beta, *, block_rows=256):
    rows, d = x2d.shape
    bm = _pick_block_rows(rows, x2d.dtype, block_rows)
    rows_p = _round_up(rows, bm)
    xp = x2d if rows_p == rows else jnp.pad(x2d, ((0, rows_p - rows), (0, 0)))

    itemsize = jnp.dtype(x2d.dtype).itemsize
    vmem = _vmem_limit_bytes(bm * d * itemsize, bm * d * itemsize, 2 * d * 4)

    out = pl.pallas_call(
        _layernorm_kernel,
        out_shape=jax.ShapeDtypeStruct((rows_p, d), x2d.dtype),
        grid_spec=pltpu.PrefetchScalarGridSpec(
            num_scalar_prefetch=0,
            grid=(rows_p // bm,),
            in_specs=[
                pl.BlockSpec((bm, d), lambda i: (i, 0)),
                pl.BlockSpec((1, d), lambda i: (0, 0)),
                pl.BlockSpec((1, d), lambda i: (0, 0)),
            ],
            out_specs=pl.BlockSpec((bm, d), lambda i: (i, 0)),
        ),
        compiler_params=pltpu.CompilerParams(
            dimension_semantics=("parallel",),
            vmem_limit_bytes=vmem,
        ),
    )(xp, gamma.reshape(1, d), beta.reshape(1, d))
    return out[:rows]


def prenorm(x, gamma, beta, fn, *, block_rows=256):
    """Generic PreNorm.forward: fn(LayerNorm(x)) for an arbitrary callable fn."""
    b, n, d = x.shape
    normed = layernorm_pallas(x.reshape(b * n, d), gamma, beta,
                              block_rows=block_rows)
    return fn(normed.reshape(b, n, d))


if __name__ == "__main__":
    B, N, D = 2, 8, 128   # D multiple of 128 -> lane-dense loads/stores/MXU

    key = jax.random.PRNGKey(0)
    kx, kw, kb, kg, kbe = jax.random.split(key, 5)

    x = jax.random.normal(kx, (B, N, D), dtype=jnp.float32)
    gamma = 1.0 + 0.1 * jax.random.normal(kg, (D,), dtype=jnp.float32)
    beta = 0.1 * jax.random.normal(kbe, (D,), dtype=jnp.float32)

    # Example `fn`: Linear(D, D).  PyTorch convention: weight is (out, in).
    w = jax.random.normal(kw, (D, D), dtype=jnp.float32) * 0.02
    b = jax.random.normal(kb, (D,), dtype=jnp.float32) * 0.02

    # Fused LN + Linear (single pallas_call; weight resident in VMEM).
    out = prenorm_linear(x, gamma, beta, w, b, block_rows=256)
    jax.block_until_ready(out)

    # Generic path: standalone LN kernel, then an arbitrary fn.
    out_generic = prenorm(x, gamma, beta, lambda y: y @ w.T + b, block_rows=256)
    jax.block_until_ready(out_generic)

    # Plain-JAX reference (matches nn.LayerNorm + nn.Linear).
    mean = jnp.mean(x, axis=-1, keepdims=True)
    var = jnp.mean((x - mean) ** 2, axis=-1, keepdims=True)
    ref = (x - mean) * jax.lax.rsqrt(var + LN_EPS) * gamma + beta
    ref = ref @ w.T + b

    assert out.shape == (B, N, D)
    assert jnp.allclose(out, ref, atol=1e-4, rtol=1e-4)
    assert jnp.allclose(out_generic, ref, atol=1e-4, rtol=1e-4)

    print("KERNEL_OK")
</pallas_src>

<mosaic_0001>
module attributes {stable_mosaic.version = 11 : i64} {
  func.func @_prenorm_linear_kernel(%arg0: i32, %arg1: memref<16x128xf32, #tpu.memory_space<vmem>>, %arg2: memref<1x128xf32, #tpu.memory_space<vmem>>, %arg3: memref<1x128xf32, #tpu.memory_space<vmem>>, %arg4: memref<128x128xf32, #tpu.memory_space<vmem>>, %arg5: memref<1x128xf32, #tpu.memory_space<vmem>>, %arg6: memref<16x128xf32, #tpu.memory_space<vmem>>) attributes {dimension_semantics = [#tpu.dimension_semantics<parallel>], iteration_bounds = array<i64: 1>, scalar_prefetch = 0 : i64, scratch_operands = 0 : i64, tpu.core_type = #tpu.core_type<tc>, window_params = [{transform_indices = @transform_0, window_bounds = array<i64: 16, 128>}, {pipeline_mode = #tpu.pipeline_mode<synchronous>, transform_indices = @transform_1, window_bounds = array<i64: 1, 128>}, {pipeline_mode = #tpu.pipeline_mode<synchronous>, transform_indices = @transform_2, window_bounds = array<i64: 1, 128>}, {pipeline_mode = #tpu.pipeline_mode<synchronous>, transform_indices = @transform_3, window_bounds = array<i64: 128, 128>}, {pipeline_mode = #tpu.pipeline_mode<synchronous>, transform_indices = @transform_4, window_bounds = array<i64: 1, 128>}, {transform_indices = @transform_5, window_bounds = array<i64: 16, 128>}]} {
    %c0 = arith.constant 0 : index
    %c0_0 = arith.constant 0 : index
    %0 = vector.load %arg1[%c0, %c0_0] : memref<16x128xf32, #tpu.memory_space<vmem>>, vector<16x128xf32>
    %cst = arith.constant dense<0.000000e+00> : vector<16xf32>
    %1 = vector.multi_reduction <add>, %0, %cst [1] : vector<16x128xf32> to vector<16xf32>
    %2 = vector.shape_cast %1 : vector<16xf32> to vector<16x1xf32>
    %3 = arith.mulf %0, %0 : vector<16x128xf32>
    %cst_1 = arith.constant dense<0.000000e+00> : vector<16xf32>
    %4 = vector.multi_reduction <add>, %3, %cst_1 [1] : vector<16x128xf32> to vector<16xf32>
    %5 = vector.shape_cast %4 : vector<16xf32> to vector<16x1xf32>
    %cst_2 = arith.constant 7.812500e-03 : f32
    %6 = vector.broadcast %cst_2 : f32 to vector<16x1xf32>
    %7 = arith.mulf %2, %6 : vector<16x1xf32>
    %cst_3 = arith.constant 7.812500e-03 : f32
    %8 = vector.broadcast %cst_3 : f32 to vector<16x1xf32>
    %9 = arith.mulf %5, %8 : vector<16x1xf32>
    %10 = arith.mulf %7, %7 : vector<16x1xf32>
    %11 = arith.subf %9, %10 : vector<16x1xf32>
    %cst_4 = arith.constant 0.000000e+00 : f32
    %12 = vector.broadcast %cst_4 : f32 to vector<16x1xf32>
    %13 = arith.maximumf %11, %12 : vector<16x1xf32>
    %cst_5 = arith.constant 9.99999974E-6 : f32
    %14 = vector.broadcast %cst_5 : f32 to vector<16x1xf32>
    %15 = arith.addf %13, %14 : vector<16x1xf32>
    %16 = math.rsqrt %15 : vector<16x1xf32>
    %17 = vector.broadcast %7 : vector<16x1xf32> to vector<16x128xf32>
    %18 = arith.subf %0, %17 : vector<16x128xf32>
    %19 = vector.broadcast %16 : vector<16x1xf32> to vector<16x128xf32>
    %20 = arith.mulf %18, %19 : vector<16x128xf32>
    %c0_6 = arith.constant 0 : index
    %c0_7 = arith.constant 0 : index
    %21 = vector.load %arg2[%c0_6, %c0_7] : memref<1x128xf32, #tpu.memory_space<vmem>>, vector<1x128xf32>
    %22 = vector.broadcast %21 : vector<1x128xf32> to vector<16x128xf32>
    %23 = arith.mulf %20, %22 : vector<16x128xf32>
    %c0_8 = arith.constant 0 : index
    %c0_9 = arith.constant 0 : index
    %24 = vector.load %arg3[%c0_8, %c0_9] : memref<1x128xf32, #tpu.memory_space<vmem>>, vector<1x128xf32>
    %25 = vector.broadcast %24 : vector<1x128xf32> to vector<16x128xf32>
    %26 = arith.addf %23, %25 : vector<16x128xf32>
    %c0_10 = arith.constant 0 : index
    %c0_11 = arith.constant 0 : index
    %27 = vector.load %arg4[%c0_10, %c0_11] : memref<128x128xf32, #tpu.memory_space<vmem>>, vector<128x128xf32>
    %cst_12 = arith.constant dense<0.000000e+00> : vector<16x128xf32>
    %28 = tpu.matmul %26, %27, %cst_12 {dimension_numbers = #tpu.dot_dimension_numbers<[1], [0], [0], [1], [0, 0, 1, 1], [], []>} : vector<16x128xf32>, vector<128x128xf32>, vector<16x128xf32> -> vector<16x128xf32>
    %c0_13 = arith.constant 0 : index
    %c0_14 = arith.constant 0 : index
    %29 = vector.load %arg5[%c0_13, %c0_14] : memref<1x128xf32, #tpu.memory_space<vmem>>, vector<1x128xf32>
    %30 = vector.broadcast %29 : vector<1x128xf32> to vector<16x128xf32>
    %31 = arith.addf %28, %30 : vector<16x128xf32>
    %c0_15 = arith.constant 0 : index
    %c0_16 = arith.constant 0 : index
    %32 = vector.load %arg6[%c0_15, %c0_16] : memref<16x128xf32, #tpu.memory_space<vmem>>, vector<16x128xf32>
    tpu.vector_store %arg6[%c0_15, %c0_16], %31 {strides = array<i32>} : memref<16x128xf32, #tpu.memory_space<vmem>>, vector<16x128xf32>,
    return
  }
  func.func @transform_0(%arg0: i32) -> (i32, i32) {
    %c0_i32 = arith.constant 0 : i32
    %c0_i32_0 = arith.constant 0 : i32
    return %arg0, %c0_i32 : i32, i32
  }
  func.func @transform_1(%arg0: i32) -> (i32, i32) {
    %c0_i32 = arith.constant 0 : i32
    %c0_i32_0 = arith.constant 0 : i32
    %c0_i32_1 = arith.constant 0 : i32
    return %c0_i32, %c0_i32_0 : i32, i32
  }
  func.func @transform_2(%arg0: i32) -> (i32, i32) {
    %c0_i32 = arith.constant 0 : i32
    %c0_i32_0 = arith.constant 0 : i32
    %c0_i32_1 = arith.constant 0 : i32
    return %c0_i32, %c0_i32_0 : i32, i32
  }
  func.func @transform_3(%arg0: i32) -> (i32, i32) {
    %c0_i32 = arith.constant 0 : i32
    %c0_i32_0 = arith.constant 0 : i32
    %c0_i32_1 = arith.constant 0 : i32
    return %c0_i32, %c0_i32_0 : i32, i32
  }
  func.func @transform_4(%arg0: i32) -> (i32, i32) {
    %c0_i32 = arith.constant 0 : i32
    %c0_i32_0 = arith.constant 0 : i32
    %c0_i32_1 = arith.constant 0 : i32
    return %c0_i32, %c0_i32_0 : i32, i32
  }
  func.func @transform_5(%arg0: i32) -> (i32, i32) {
    %c0_i32 = arith.constant 0 : i32
    %c0_i32_0 = arith.constant 0 : i32
    return %arg0, %c0_i32 : i32, i32
  }
}

</mosaic_0001>

<bundles_post_ra>
// kernel: tpu_custom_call.1
= control target key start
LH: loop header
LB: loop body
LE: loop exit
PB: predicated region body
PF: predicated region fallthrough
CT: control target
= control target key end

     0   :  { %10 = vsyncpa [#allocation3], 0  ;;  %s485_s0 = inlined_call_operand.hbm [shape: f32[16,128], index: 0, kind: input, shape index: {}]   ;;  %s486_s1 = inlined_call_operand.vmem [shape: f32[1,128], index: 1, kind: input, shape index: {}]   ;;  %s487_s2 = inlined_call_operand.vmem [shape: f32[1,128], index: 2, kind: input, shape index: {}]   ;;  %s488_s3 = inlined_call_operand.hbm [shape: f32[128,128], index: 3, kind: input, shape index: {}]   ;;  %s489_s4 = inlined_call_operand.vmem [shape: f32[1,128], index: 4, kind: input, shape index: {}]   ;;  %s490_s5 = inlined_call_operand.hbm [shape: f32[16,128], index: 5, kind: output, shape index: {}]  }
   0x1   :  { %11 = vsyncpa [#allocation6], 0 }
   0x2   :  { %12 = vsyncpa [#allocation4], 0  ;;  %s384_s18 = smov [#allocation2]   ;;  %s312_s22 = scalar_lea.hbm %s485_s0, 256 }
   0x3   :  { %s18_s19 = sshll.u32 %s384_s18, 4  ;;  %p313_p0 = scmp.ne.s32.totalorder %s485_s0, %s312_s22  ;;  %s19_s19 = int_to_ptr.vmem [resolvable:$true] %s18_s19 }
   0x4   :  { %p316_p1 = scmp.lt.u32.totalorder %s312_s22, %s485_s0 }
   0x6   :  { %p318_p2 = pnand %p316_p1, %p313_p0 }
   0x8   :  { %321 = shalt.err (!%p318_p2)
}
   0x9   :  { %s322_s27 = scalar_lea.vmem %s19_s19, 256  ;;  %p327_p4 = scmp.lt.s32.totalorder %s19_s19, %s19_s19 }
   0xa   :  { %p323_p3 = scmp.ne.s32.totalorder %s19_s19, %s322_s27  ;;  %p328_p5 = scmp.lt.s32.totalorder %s322_s27, %s322_s27 }
   0xc   :  { %p329_p6 = por %p328_p5, %p327_p4 }
   0xe   :  { %p330_p7 = pnand %p329_p6, %p323_p3 }
  0x10   :  { %333 = shalt.err (!%p330_p7)
}
  0x11   :  { %s385_s28 = smov 128   ;;  %s386_s29 = smov 8  }
  0x12   :  { %24 = dma.hbm_to_vmem [thread:$0]  %s485_s0, 256, %s19_s19, [#allocation3], %s385_s28, %s385_s28, %s386_s29  }
  0x13   :  { %s387_s7 = smov [#allocation5]   ;;  %s334_s11 = scalar_lea.hbm %s488_s3, 2048 }
  0x14   :  { %s34_s8 = sshll.u32 %s387_s7, 4  ;;  %p335_p8 = scmp.ne.s32.totalorder %s488_s3, %s334_s11  ;;  %s35_s8 = int_to_ptr.vmem [resolvable:$true] %s34_s8 }
  0x15   :  { %p338_p9 = scmp.lt.u32.totalorder %s334_s11, %s488_s3 }
  0x17   :  { %p340_p10 = pnand %p338_p9, %p335_p8 }
  0x19   :  { %343 = shalt.err (!%p340_p10)
}
  0x1a   :  { %s344_s16 = scalar_lea.vmem %s35_s8, 2048  ;;  %p349_p12 = scmp.lt.s32.totalorder %s35_s8, %s35_s8 }
  0x1b   :  { %p345_p11 = scmp.ne.s32.totalorder %s35_s8, %s344_s16  ;;  %p350_p13 = scmp.lt.s32.totalorder %s344_s16, %s344_s16 }
  0x1d   :  { %p351_p0 = por %p350_p13, %p349_p12 }
  0x1f   :  { %p352_p1 = pnand %p351_p0, %p345_p11 }
  0x21   :  { %355 = shalt.err (!%p352_p1)
}
  0x22   :  { %40 = dma.hbm_to_vmem [thread:$0]  %s488_s3, 2048, %s35_s8, [#allocation6], %s385_s28, %s385_s28, %s386_s29  }
  0x23   :  { %378 = dma.done.wait [#allocation3], 256  }
  0x24   :  { %379 = vsyncadd [#allocation3], 4294967040 }
  0x25   :  { %380 = dma.done.wait [#allocation6], 2048  }
  0x26   :  { %381 = vsyncadd [#allocation6], 4294965248  ;;  %v449_v0 = vld [vmem:[#allocation2] sm:$0xff]  ;;  %v451_v1 = vld [vmem:[#allocation2 + $0x8] sm:$0xff] }
  0x27   :  { %v97_v2 = vld [vmem:[#allocation5] sm:$0xff]  ;;  %51 = vadd.xlane.f32.xlu0 %v449_v0  ;;  %v55_v3 = vmul.f32 %v449_v0, %v449_v0  ;;  %v98_v4 = vld [vmem:[#allocation5 + $0x8] sm:$0xff]  ;;  %v56_v6 = vmul.f32 %v451_v1, %v451_v1  ;;  %v99_v7 = vld [vmem:[#allocation5 + $0x10] sm:$0xff] }
  0x28   :  { %v271_v5 = vpack.c.bf16 %v98_v4, %v97_v2  ;;  %v100_v8 = vld [vmem:[#allocation5 + $0x18] sm:$0xff]  ;;  %v101_v10 = vld [vmem:[#allocation5 + $0x20] sm:$0xff]  ;;  %v102_v11 = vld [vmem:[#allocation5 + $0x28] sm:$0xff] }
  0x29   :  { %57 = vadd.xlane.f32.xlu1 %v55_v3  ;;  %v275_v9 = vpack.c.bf16 %v100_v8, %v99_v7  ;;  %v279_v12 = vpack.c.bf16 %v102_v11, %v101_v10  ;;  %v103_v13 = vld [vmem:[#allocation5 + $0x30] sm:$0xff]  ;;  %v104_v14 = vld [vmem:[#allocation5 + $0x38] sm:$0xff]  ;;  %v105_v16 = vld [vmem:[#allocation5 + $0x40] sm:$0xff] }
  0x2a   :  { %272 = vmatprep.subr.bf16.mxu0 %v271_v5  ;;  %v283_v15 = vpack.c.bf16 %v104_v14, %v103_v13  ;;  %v106_v17 = vld [vmem:[#allocation5 + $0x48] sm:$0xff]  ;;  %v107_v19 = vld [vmem:[#allocation5 + $0x50] sm:$0xff]  ;;  %v108_v20 = vld [vmem:[#allocation5 + $0x58] sm:$0xff] }
  0x2b   :  { %53 = vadd.xlane.f32.xlu0 %v451_v1  ;;  %274 = vmatpush3.bf16.msra.mxu0 %v271_v5  ;;  %v287_v18 = vpack.c.bf16 %v106_v17, %v105_v16  ;;  %v109_v21 = vld [vmem:[#allocation5 + $0x60] sm:$0xff]  ;;  %v291_v22 = vpack.c.bf16 %v108_v20, %v107_v19  ;;  %v110_v23 = vld [vmem:[#allocation5 + $0x68] sm:$0xff]  ;;  %v111_v25 = vld [vmem:[#allocation5 + $0x70] sm:$0xff] }
  0x2c   :  { %276 = vmatprep.subr.bf16.mxu0 %v275_v9  ;;  %v295_v24 = vpack.c.bf16 %v110_v23, %v109_v21  ;;  %v112_v26 = vld [vmem:[#allocation5 + $0x78] sm:$0xff]  ;;  %v215_v46 = vld [vmem:[%s486_s1] ss:$0 sm:$0xff]  ;;  %s388_s1 = smov [#allocation7]  }
  0x2d   :  { %59 = vadd.xlane.f32.xlu1 %v56_v6  ;;  %v299_v27 = vpack.c.bf16 %v112_v26, %v111_v25  ;;  %v216_v48 = vld [vmem:[%s487_s2] ss:$0 sm:$0xff]  ;;  %s202_s23 = sshll.u32 %s388_s1, 4  ;;  %s203_s23 = int_to_ptr.vmem [resolvable:$true] %s202_s23 }
  0x2e   :  { %v217_v56 = vld [vmem:[%s489_s4] ss:$0 sm:$0xff]  ;;  %s356_s2 = scalar_lea.vmem %s203_s23, 256  ;;  %p361_p3 = scmp.lt.s32.totalorder %s203_s23, %s203_s23 }
  0x2f   :  { %278 = vmatpush3.bf16.msra.mxu0 %v275_v9  ;;  %p357_p2 = scmp.ne.s32.totalorder %s203_s23, %s356_s2  ;;  %p362_p4 = scmp.lt.s32.totalorder %s356_s2, %s356_s2 }
  0x30   :  { %280 = vmatprep.subr.bf16.mxu0 %v279_v12 }
  0x31   :  { %p363_p5 = por %p362_p4, %p361_p3 }
  0x33   :  { %282 = vmatpush3.bf16.msra.mxu0 %v279_v12  ;;  %p364_p6 = pnand %p363_p5, %p357_p2 }
  0x34   :  { %284 = vmatprep.subr.bf16.mxu0 %v283_v15 }
  0x37   :  { %286 = vmatpush3.bf16.msra.mxu0 %v283_v15 }
  0x38   :  { %288 = vmatprep.subr.bf16.mxu0 %v287_v18 }
  0x3b   :  { %290 = vmatpush3.bf16.msra.mxu0 %v287_v18 }
  0x3c   :  { %292 = vmatprep.subr.bf16.mxu0 %v291_v22 }
  0x3f   :  { %294 = vmatpush3.bf16.msra.mxu0 %v291_v22 }
  0x40   :  { %296 = vmatprep.subr.bf16.mxu0 %v295_v24 }
  0x43   :  { %298 = vmatpush3.bf16.msra.mxu0 %v295_v24 }
  0x44   :  { %300 = vmatprep.subr.bf16.mxu0 %v299_v27 }
  0x47   :  { %302 = vmatpush3.bf16.msra.mxu0 %v299_v27 }
  0xb4   :  { %v52_v28 = vpop.xlane.xlu0 %51 }
  0xb5   :  { %v61_v29 = vmul.f32 0.0078125, %v52_v28 }
  0xb6   :  { %v58_v30 = vpop.xlane.xlu1 %57 }
  0xb7   :  { %v65_v31 = vmul.f32 %v61_v29, %v61_v29  ;;  %v63_v32 = vmul.f32 0.0078125, %v58_v30  ;;  %v75_v44 = vsub.f32 %v449_v0, %v61_v29 }
  0xb8   :  { %v54_v33 = vpop.xlane.xlu0 %53 }
  0xb9   :  { %v67_v34 = vsub.f32 %v63_v32, %v65_v31  ;;  %v62_v35 = vmul.f32 0.0078125, %v54_v33 }
  0xba   :  { %v60_v36 = vpop.xlane.xlu1 %59 }
  0xbb   :  { %v69_v37 = vmax.f32 %v67_v34, 0.0  ;;  %v66_v38 = vmul.f32 %v62_v35, %v62_v35  ;;  %v64_v39 = vmul.f32 0.0078125, %v60_v36  ;;  %v76_v49 = vsub.f32 %v451_v1, %v62_v35 }
  0xbd   :  { %v71_v40 = vadd.f32 1e-05, %v69_v37  ;;  %v68_v41 = vsub.f32 %v64_v39, %v66_v38 }
  0xbf   :  { %308 = vrsqrt.f32 %v71_v40  ;;  %v70_v42 = vmax.f32 %v68_v41, 0.0 }
  0xc1   :  { %v72_v43 = vadd.f32 1e-05, %v70_v42 }
  0xc3   :  { %310 = vrsqrt.f32 %v72_v43 }
  0xc9   :  { %v309_v45 = vpop.eup %308 }
  0xca   :  { %v77_v47 = vmul.f32 %v309_v45, %v75_v44 }
  0xcc   :  { %v86_v50 = vmul.f32 %v215_v46, %v77_v47 }
  0xcd   :  { %v311_v51 = vpop.eup %310 }
  0xce   :  { %v78_v52 = vmul.f32 %v311_v51, %v76_v49  ;;  %v95_v53 = vadd.f32 %v216_v48, %v86_v50 }
  0xd0   :  { %v87_v54 = vmul.f32 %v215_v46, %v78_v52  ;;  %268 = vmatprep.mubr.f32.mxu0 %v95_v53 }
  0xd2   :  { %v96_v55 = vadd.f32 %v216_v48, %v87_v54 }
  0xd4   :  { %269 = vmatmul.mubr.f32.vlgmr.msra.gmra.mrb[0].mxu0 %v96_v55 }
 0x1a7   :  { %v270_v57 = vpop.f32.mrb[0].mxu0 }
 0x1a8   :  { %v192_v58 = vadd.f32 %v270_v57, %v217_v56  ;;  %v186_v59 = vpop.f32.mrb[1].mxu0 }
 0x1a9   :  { %v187_v60 = vadd.f32 %v217_v56, %v186_v59 }
 0x1aa   :  { %196 = vst [vmem:[#allocation7 + $0x8] sm:$0xff] %v192_v58 }
 0x1ab   :  { %195 = vst [vmem:[#allocation7] sm:$0xff] %v187_v60 }
 0x1ac   :  { %367 = shalt.err (!%p364_p6)
}
 0x1ad   :  { %s368_s4 = scalar_lea.hbm %s490_s5, 256 }
 0x1ae   :  { %p369_p7 = scmp.ne.s32.totalorder %s490_s5, %s368_s4  ;;  %p372_p8 = scmp.lt.u32.totalorder %s368_s4, %s490_s5 }
 0x1b0   :  { %p374_p9 = pnand %p372_p8, %p369_p7 }
 0x1b2   :  { %377 = shalt.err (!%p374_p9)
}
 0x1b3   :  { %208 = dma.vmem_to_hbm [thread:$0]  %s203_s23, 256, %s490_s5, [#allocation4], %s385_s28, %s385_s28, %s386_s29  }
 0x1b4   :  { %382 = dma.done.wait [#allocation4], 256  }
 0x1b5   :  { %383 = vsyncadd [#allocation4], 4294967040 }
 0x1b6   :  { %212 = vsyncpa [#allocation3], 1 }
 0x1b7   :  { %213 = vsyncpa [#allocation6], 1 }
 0x1b8   :  { %214 = vsyncpa [#allocation4], 1 }

</bundles_post_ra>
